<compile_context>
chip_gen: v7x
topology: tpu7x:2x2x1
jax: 0.10.0
libtpu: 0.0.40
codegen_flags: <defaults>
</compile_context>

<pallas_src>
import functools

import jax
import jax.numpy as jnp
from jax.experimental import pallas as pl
from jax.experimental.pallas import tpu as pltpu


def _round_up(n, m):
    return (n + m - 1) // m * m


# ---------------------------------------------------------------------------
# Pass 1: in-kernel shifted-tap conv + global per-channel sum / sum-of-squares.
# Accumulators are per-batch resident blocks -> batch axis can be "parallel".
# ---------------------------------------------------------------------------
def _conv_stats_kernel(xc_ref, xn_ref, w_ref, mask_ref, sum_ref, sumsq_ref,
                       xcat_ref, *, taps, chunk, n_chunks):
    s = pl.program_id(1)

    @pl.when(s == 0)           # per-batch init (valid with batch "parallel")
    def _init():
        sum_ref[...] = jnp.zeros_like(sum_ref)
        sumsq_ref[...] = jnp.zeros_like(sumsq_ref)

    tile_s = n_chunks * chunk
    # Current block + next block (halo) into one contiguous VMEM scratch.
    xcat_ref[:, :tile_s] = xc_ref[...]
    xcat_ref[:, tile_s:] = xn_ref[...]

    c_pad = sum_ref.shape[0]
    w_taps = [w_ref[i] for i in range(len(taps))]      # (C_pad, C_in) bf16

    psum = jnp.zeros((c_pad, 1), jnp.float32)
    psq = jnp.zeros((c_pad, 1), jnp.float32)
    for ci in range(n_chunks):
        c0 = ci * chunk
        acc = jnp.zeros((c_pad, chunk), jnp.float32)
        for wt, d in zip(w_taps, taps):                # static lane offsets
            xs = xcat_ref[:, d + c0:d + c0 + chunk]    # (C_in, chunk) bf16
            acc = acc + jnp.dot(wt, xs, preferred_element_type=jnp.float32)
        # 0/1 validity mask (kills wrapped columns / strided-out positions).
        am = acc * mask_ref[:, c0:c0 + chunk]
        psum = psum + jnp.sum(am, axis=1, keepdims=True)
        psq = psq + jnp.sum(am * acc, axis=1, keepdims=True)
    sum_ref[...] += psum
    sumsq_ref[...] += psq


# ---------------------------------------------------------------------------
# Pass 2: conv recomputed (K << C_pad -> recompute is cheaper than caching y)
# + folded VBN scale/shift + LeakyReLU, written channel-major in bf16.
# ---------------------------------------------------------------------------
def _conv_norm_lrelu_kernel(xc_ref, xn_ref, w_ref, scale_ref, shift_ref,
                            out_ref, xcat_ref, *, taps, chunk, n_chunks,
                            negative_slope):
    tile_s = n_chunks * chunk
    xcat_ref[:, :tile_s] = xc_ref[...]
    xcat_ref[:, tile_s:] = xn_ref[...]

    c_pad = out_ref.shape[0]
    w_taps = [w_ref[i] for i in range(len(taps))]
    # Hoist the lane-broadcasts of the per-channel scale/shift out of the loop.
    scale = jnp.broadcast_to(scale_ref[...], (c_pad, chunk))
    shift = jnp.broadcast_to(shift_ref[...], (c_pad, chunk))

    for ci in range(n_chunks):
        c0 = ci * chunk
        acc = jnp.zeros((c_pad, chunk), jnp.float32)
        for wt, d in zip(w_taps, taps):
            xs = xcat_ref[:, d + c0:d + c0 + chunk]
            acc = acc + jnp.dot(wt, xs, preferred_element_type=jnp.float32)
        xn = acc * scale + shift                       # conv-bias folded in
        act = jnp.where(xn >= 0, xn, negative_slope * xn)
        out_ref[:, c0:c0 + chunk] = act.astype(out_ref.dtype)


# ---------------------------------------------------------------------------
# One-time parameter preparation (do NOT redo per forward call).
# ---------------------------------------------------------------------------
def prepare_conv2d_block_d_params(params, kernel_size, c_pad_multiple=16):
    w = params["weight"]                               # (C_out, C_in, k, k)
    C_out, C_in, k, k2 = w.shape
    assert k == kernel_size and k2 == kernel_size
    C_pad = _round_up(max(C_out, c_pad_multiple), c_pad_multiple)
    # tap order: i-major, j-minor  (matches d = i*W + j in the kernel)
    w_t = jnp.transpose(w, (2, 3, 0, 1)).reshape(k * k, C_out, C_in)
    w_t = jnp.pad(w_t, ((0, 0), (0, C_pad - C_out), (0, 0))).astype(jnp.bfloat16)
    return dict(
        w_taps=w_t, k=k, C_out=C_out, C_in=C_in, C_pad=C_pad,
        bias=params["bias"].astype(jnp.float32).reshape(C_out),
        gamma=params["gamma"].astype(jnp.float32).reshape(C_out),
        beta=params["beta"].astype(jnp.float32).reshape(C_out),
    )


def conv2d_block_d_forward(x, params=None, *, kernel_size, stride=1, padding=0,
                           negative_slope=0.03, eps=1e-5,
                           ref_mean=None, ref_mean_sq=None,
                           tile_s_max=2048, prepared=None):
    """Forward pass of Conv2dBlockD.

    Returns (out, mean, mean_sq): out is (B, C_out, Ho, Wo) NCHW f32; mean /
    mean_sq are (1, C_out, 1) (blended with ref stats when provided), matching
    the PyTorch module.
    """
    if prepared is None:
        prepared = prepare_conv2d_block_d_params(params, kernel_size)
    k = prepared["k"]
    C_out, C_in, C_pad = prepared["C_out"], prepared["C_in"], prepared["C_pad"]

    B = x.shape[0]
    assert x.shape[1] == C_in
    if padding > 0:
        x = jnp.pad(x, ((0, 0), (0, 0), (padding, padding),
                        (padding, padding)))
    H, W = x.shape[2], x.shape[3]
    Ho = (H - k) // stride + 1
    Wo = (W - k) // stride + 1
    assert Ho >= 1 and Wo >= 1

    HW = H * W
    halo = (k - 1) * (W + 1)          # max forward reach of a tap (flat grid)
    # Register-chunk over lanes: keep the (C_pad, chunk) f32 accumulator small.
    chunk = 256 if C_pad <= 128 else 128
    tile_s = min(tile_s_max, _round_up(HW, chunk))     # don't over-pad tiny inputs
    tile_s = max(tile_s, _round_up(halo, chunk))       # one-neighbor halo must fit
    tile_s = _round_up(tile_s, chunk)
    L_pad = _round_up(HW, tile_s)
    n_t = L_pad // tile_s
    n_chunks = tile_s // chunk
    assert halo <= tile_s and tile_s % chunk == 0
    taps = tuple(i * W + j for i in range(k) for j in range(k))
    n_taps = k * k

    # Flattened bf16 input (read once per pass; no k^2 im2col blob).
    x_flat = x.reshape(B, C_in, HW).astype(jnp.bfloat16)
    if L_pad > HW:
        x_flat = jnp.pad(x_flat, ((0, 0), (0, 0), (0, L_pad - HW)))

    # Host-built 0/1 validity mask over the full stride-1 flat output grid
    # (kills wrapped columns, strided-out positions and tail padding in pass 1).
    t_idx = jnp.arange(L_pad, dtype=jnp.int32)
    r, c = t_idx // W, t_idx % W
    valid = ((r % stride == 0) & (c % stride == 0) &
             (r <= (Ho - 1) * stride) & (c <= (Wo - 1) * stride))
    mask = valid.astype(jnp.float32).reshape(1, L_pad)

    w_taps = prepared["w_taps"]

    x_cur_spec = pl.BlockSpec((None, C_in, tile_s), lambda b, s: (b, 0, s))
    x_nxt_spec = pl.BlockSpec(
        (None, C_in, tile_s),
        lambda b, s: (b, 0, jnp.minimum(s + 1, n_t - 1)))     # clamped halo
    w_spec = pl.BlockSpec((n_taps, C_pad, C_in), lambda b, s: (0, 0, 0))
    mask_spec = pl.BlockSpec((1, tile_s), lambda b, s: (0, s))
    stat_spec = pl.BlockSpec((None, C_pad, 1), lambda b, s: (b, 0, 0))
    col_spec = pl.BlockSpec((C_pad, 1), lambda b, s: (0, 0))
    out_spec = pl.BlockSpec((None, C_pad, tile_s), lambda b, s: (b, 0, s))

    # Explicit scoped-VMEM budget (covers v5e's 16 MiB default and v7x's
    # 64 MiB physical): double-buffered streams + resident weights + scratch.
    vmem_need = (2 * (2 * C_in * tile_s * 2 + tile_s * 4 + C_pad * tile_s * 2)
                 + 2 * n_taps * C_pad * C_in * 2
                 + C_in * 2 * tile_s * 2 + 16 * C_pad * 4)
    vmem_limit = int(min(max(4 * vmem_need, 32 * 1024 * 1024),
                         48 * 1024 * 1024))

    grid = (B, n_t)

    # ---- Pass 1: per-batch per-channel sum / sum-of-squares ---------------
    sums, sumsqs = pl.pallas_call(
        functools.partial(_conv_stats_kernel, taps=taps, chunk=chunk,
                          n_chunks=n_chunks),
        grid=grid,
        in_specs=[x_cur_spec, x_nxt_spec, w_spec, mask_spec],
        out_specs=(stat_spec, stat_spec),
        out_shape=(jax.ShapeDtypeStruct((B, C_pad, 1), jnp.float32),
                   jax.ShapeDtypeStruct((B, C_pad, 1), jnp.float32)),
        scratch_shapes=[pltpu.VMEM((C_in, 2 * tile_s), jnp.bfloat16)],
        compiler_params=pltpu.CompilerParams(
            dimension_semantics=("parallel", "arbitrary"),
            vmem_limit_bytes=vmem_limit),
    )(x_flat, x_flat, w_taps, mask)

    # ---- Tiny host epilogue: reduce over batch, fold bias analytically ----
    n_elems = float(B * Ho * Wo)
    sum_c = jnp.sum(sums[:, :C_out, 0], axis=0)
    sumsq_c = jnp.sum(sumsqs[:, :C_out, 0], axis=0)
    mean_y = sum_c / n_elems                           # stats of bias-less conv
    msq_y = sumsq_c / n_elems
    bias = prepared["bias"]
    mean_b = mean_y + bias                             # E[y + b]
    msq_b = msq_y + 2.0 * bias * mean_y + bias * bias  # E[(y + b)^2]

    if ref_mean is None or ref_mean_sq is None:
        mean_v, msq_v = mean_b, msq_b
    else:
        new_coeff = 1.0 / (B + 1.0)
        old_coeff = 1.0 - new_coeff
        mean_v = new_coeff * mean_b + old_coeff * ref_mean.reshape(C_out)
        msq_v = new_coeff * msq_b + old_coeff * ref_mean_sq.reshape(C_out)

    # Fold mean / std / gamma / beta / conv-bias into per-channel scale&shift:
    #   out = ((y + bias) - mean) / std * gamma + beta = y*scale + shift
    inv_std = jax.lax.rsqrt(eps + msq_v - mean_v * mean_v)
    scale = prepared["gamma"] * inv_std
    shift = prepared["beta"] + (bias - mean_v) * scale
    scale_pad = jnp.zeros((C_pad, 1), jnp.float32).at[:C_out, 0].set(scale)
    shift_pad = jnp.zeros((C_pad, 1), jnp.float32).at[:C_out, 0].set(shift)

    # ---- Pass 2: conv + scale/shift + LeakyReLU, channel-major bf16 -------
    out_full = pl.pallas_call(
        functools.partial(_conv_norm_lrelu_kernel, taps=taps, chunk=chunk,
                          n_chunks=n_chunks, negative_slope=negative_slope),
        grid=grid,
        in_specs=[x_cur_spec, x_nxt_spec, w_spec, col_spec, col_spec],
        out_specs=out_spec,
        out_shape=jax.ShapeDtypeStruct((B, C_pad, L_pad), jnp.bfloat16),
        scratch_shapes=[pltpu.VMEM((C_in, 2 * tile_s), jnp.bfloat16)],
        compiler_params=pltpu.CompilerParams(
            dimension_semantics=("parallel", "parallel"),
            vmem_limit_bytes=vmem_limit),
    )(x_flat, x_flat, w_taps, scale_pad, shift_pad)

    # Dropout is nn.Identity() for use_dropout=False (module default) -> no-op.
    # Extract valid (strided) positions and restore NCHW (one XLA slice copy).
    full = out_full[:, :C_out, :(H - k + 1) * W].reshape(B, C_out, H - k + 1, W)
    out = full[:, :, ::stride, ::stride][:, :, :Ho, :Wo].astype(jnp.float32)

    mean = mean_v.reshape(1, C_out, 1)
    mean_sq = msq_v.reshape(1, C_out, 1)
    return out, mean, mean_sq


if __name__ == "__main__":
    key = jax.random.PRNGKey(0)
    k1, k2, k3, k4, k5, k6 = jax.random.split(key, 6)

    B, C_in, H, W = 2, 4, 16, 16
    C_out, ksz = 8, 3
    neg_slope, eps = 0.03, 1e-5

    x = jax.random.normal(k1, (B, C_in, H, W), jnp.float32)

    fan_in = C_in * ksz * ksz
    params = dict(
        weight=jax.random.normal(k2, (C_out, C_in, ksz, ksz), jnp.float32)
        / jnp.sqrt(fan_in),
        bias=0.1 * jax.random.normal(k3, (C_out,), jnp.float32),
        gamma=1.0 + 0.02 * jax.random.normal(k4, (1, C_out, 1), jnp.float32),
        beta=jnp.zeros((1, C_out, 1), jnp.float32),
    )

    # Parameters are padded/cast/transposed once, not per forward call.
    prepared = prepare_conv2d_block_d_params(params, kernel_size=ksz)

    # ---- run the Pallas kernels (no-reference-stats path) -----------------
    out, mean, mean_sq = conv2d_block_d_forward(
        x, kernel_size=ksz, stride=1, padding=0,
        negative_slope=neg_slope, eps=eps, prepared=prepared)
    jax.block_until_ready((out, mean, mean_sq))

    # ---- plain-JAX (f32) reference implementing the PyTorch module --------
    def torch_ref(x, params, ref_mean=None, ref_mean_sq=None):
        y = jax.lax.conv_general_dilated(
            x, params["weight"], (1, 1), "VALID",
            dimension_numbers=("NCHW", "OIHW", "NCHW"),
            precision=jax.lax.Precision.HIGHEST,
        ) + params["bias"][None, :, None, None]
        Bq, Cq = y.shape[0], y.shape[1]
        y3 = y.reshape(Bq, Cq, -1)
        m = y3.mean(axis=2, keepdims=True).mean(axis=0, keepdims=True)
        msq = (y3 ** 2).mean(axis=2, keepdims=True).mean(axis=0, keepdims=True)
        if ref_mean is not None and ref_mean_sq is not None:
            nc = 1.0 / (Bq + 1.0)
            m = nc * m + (1.0 - nc) * ref_mean
            msq = nc * msq + (1.0 - nc) * ref_mean_sq
        std = jnp.sqrt(eps + msq - m ** 2)
        xn = ((y3 - m) / std) * params["gamma"] + params["beta"]
        o = jnp.where(xn >= 0, xn, neg_slope * xn).reshape(y.shape)
        return o, m, msq

    ref_out, ref_m, ref_msq = torch_ref(x, params)
    Ho = H - ksz + 1

    assert out.shape == (B, C_out, Ho, Ho)
    assert mean.shape == (1, C_out, 1) and mean_sq.shape == (1, C_out, 1)
    # bf16 MXU operands / bf16 output store vs f32 reference -> 2e-2 tolerance.
    assert jnp.allclose(out, ref_out, rtol=2e-2, atol=2e-2)
    assert jnp.allclose(mean, ref_m, rtol=2e-2, atol=2e-2)
    assert jnp.allclose(mean_sq, ref_msq, rtol=2e-2, atol=2e-2)

    # ---- reference-statistics path (VBN blend) -----------------------------
    rm = 0.05 * jax.random.normal(k5, (1, C_out, 1), jnp.float32)
    rmsq = 1.0 + 0.05 * jnp.abs(jax.random.normal(k6, (1, C_out, 1),
                                                  jnp.float32))
    out2, mean2, msq2 = conv2d_block_d_forward(
        x, kernel_size=ksz, stride=1, padding=0,
        negative_slope=neg_slope, eps=eps, ref_mean=rm, ref_mean_sq=rmsq,
        prepared=prepared)
    jax.block_until_ready((out2, mean2, msq2))

    ref_out2, ref_m2, ref_msq2 = torch_ref(x, params, rm, rmsq)
    assert jnp.allclose(out2, ref_out2, rtol=2e-2, atol=2e-2)
    assert jnp.allclose(mean2, ref_m2, rtol=2e-2, atol=2e-2)
    assert jnp.allclose(msq2, ref_msq2, rtol=2e-2, atol=2e-2)

    print("KERNEL_OK")
</pallas_src>

<mosaic_0001>
module attributes {stable_mosaic.version = 11 : i64} {
  func.func @_conv_stats_kernel(%arg0: i32, %arg1: i32, %arg2: memref<1x4x256xbf16, #tpu.memory_space<vmem>>, %arg3: memref<1x4x256xbf16, #tpu.memory_space<vmem>>, %arg4: memref<9x16x4xbf16, #tpu.memory_space<vmem>>, %arg5: memref<1x256xf32, #tpu.memory_space<vmem>>, %arg6: memref<1x16x1xf32, #tpu.memory_space<vmem>>, %arg7: memref<1x16x1xf32, #tpu.memory_space<vmem>>, %arg8: memref<4x512xbf16, #tpu.memory_space<vmem>>) attributes {dimension_semantics = [#tpu.dimension_semantics<parallel>, #tpu.dimension_semantics<arbitrary>], iteration_bounds = array<i64: 2, 1>, scalar_prefetch = 0 : i64, scratch_operands = 1 : i64, tpu.core_type = #tpu.core_type<tc>, window_params = [{transform_indices = @transform_0, window_bounds = array<i64: 1, 4, 256>}, {transform_indices = @transform_1, window_bounds = array<i64: 1, 4, 256>}, {pipeline_mode = #tpu.pipeline_mode<synchronous>, transform_indices = @transform_2, window_bounds = array<i64: 9, 16, 4>}, {transform_indices = @transform_3, window_bounds = array<i64: 1, 256>}, {transform_indices = @transform_4, window_bounds = array<i64: 1, 16, 1>}, {transform_indices = @transform_5, window_bounds = array<i64: 1, 16, 1>}]} {
    %c0_i32 = arith.constant 0 : i32
    %0 = arith.cmpi eq, %arg1, %c0_i32 : i32
    %1 = arith.extui %0 : i1 to i32
    %c0_i32_0 = arith.constant 0 : i32
    %2 = arith.cmpi ne, %1, %c0_i32_0 : i32
    scf.if %2 {
      %cst_67 = arith.constant 0.000000e+00 : f32
      %79 = vector.broadcast %cst_67 : f32 to vector<16x1xf32>
      %c0_68 = arith.constant 0 : index
      %c0_69 = arith.constant 0 : index
      %c0_70 = arith.constant 0 : index
      %80 = vector.load %arg6[%c0_68, %c0_69, %c0_70] : memref<1x16x1xf32, #tpu.memory_space<vmem>>, vector<1x16x1xf32>
      %81 = vector.shape_cast %80 : vector<1x16x1xf32> to vector<16x1xf32>
      %82 = vector.shape_cast %79 : vector<16x1xf32> to vector<1x16x1xf32>
      tpu.vector_store %arg6[%c0_68, %c0_69, %c0_70], %82 {strides = array<i32>} : memref<1x16x1xf32, #tpu.memory_space<vmem>>, vector<1x16x1xf32>,
      %cst_71 = arith.constant 0.000000e+00 : f32
      %83 = vector.broadcast %cst_71 : f32 to vector<16x1xf32>
      %c0_72 = arith.constant 0 : index
      %c0_73 = arith.constant 0 : index
      %c0_74 = arith.constant 0 : index
      %84 = vector.load %arg7[%c0_72, %c0_73, %c0_74] : memref<1x16x1xf32, #tpu.memory_space<vmem>>, vector<1x16x1xf32>
      %85 = vector.shape_cast %84 : vector<1x16x1xf32> to vector<16x1xf32>
      %86 = vector.shape_cast %83 : vector<16x1xf32> to vector<1x16x1xf32>
      tpu.vector_store %arg7[%c0_72, %c0_73, %c0_74], %86 {strides = array<i32>} : memref<1x16x1xf32, #tpu.memory_space<vmem>>, vector<1x16x1xf32>,
    } else {
    }
    %c0 = arith.constant 0 : index
    %c0_1 = arith.constant 0 : index
    %c0_2 = arith.constant 0 : index
    %3 = vector.load %arg2[%c0, %c0_1, %c0_2] : memref<1x4x256xbf16, #tpu.memory_space<vmem>>, vector<1x4x256xbf16>
    %4 = vector.shape_cast %3 : vector<1x4x256xbf16> to vector<4x256xbf16>
    %c0_3 = arith.constant 0 : index
    %c0_4 = arith.constant 0 : index
    %5 = vector.load %arg8[%c0_3, %c0_4] : memref<4x512xbf16, #tpu.memory_space<vmem>>, vector<4x256xbf16>
    tpu.vector_store %arg8[%c0_3, %c0_4], %4 {strides = array<i32>} : memref<4x512xbf16, #tpu.memory_space<vmem>>, vector<4x256xbf16>,
    %c0_5 = arith.constant 0 : index
    %c0_6 = arith.constant 0 : index
    %c0_7 = arith.constant 0 : index
    %6 = vector.load %arg3[%c0_5, %c0_6, %c0_7] : memref<1x4x256xbf16, #tpu.memory_space<vmem>>, vector<1x4x256xbf16>
    %7 = vector.shape_cast %6 : vector<1x4x256xbf16> to vector<4x256xbf16>
    %c0_8 = arith.constant 0 : index
    %c256 = arith.constant 256 : index
    %8 = vector.load %arg8[%c0_8, %c256] : memref<4x512xbf16, #tpu.memory_space<vmem>>, vector<4x256xbf16>
    tpu.vector_store %arg8[%c0_8, %c256], %7 {strides = array<i32>} : memref<4x512xbf16, #tpu.memory_space<vmem>>, vector<4x256xbf16>,
    %c0_9 = arith.constant 0 : index
    %c0_10 = arith.constant 0 : index
    %c0_11 = arith.constant 0 : index
    %9 = vector.load %arg4[%c0_9, %c0_10, %c0_11] : memref<9x16x4xbf16, #tpu.memory_space<vmem>>, vector<1x16x4xbf16>
    %10 = vector.shape_cast %9 : vector<1x16x4xbf16> to vector<16x4xbf16>
    %c1 = arith.constant 1 : index
    %c0_12 = arith.constant 0 : index
    %c0_13 = arith.constant 0 : index
    %11 = vector.load %arg4[%c1, %c0_12, %c0_13] : memref<9x16x4xbf16, #tpu.memory_space<vmem>>, vector<1x16x4xbf16>
    %12 = vector.shape_cast %11 : vector<1x16x4xbf16> to vector<16x4xbf16>
    %c2 = arith.constant 2 : index
    %c0_14 = arith.constant 0 : index
    %c0_15 = arith.constant 0 : index
    %13 = vector.load %arg4[%c2, %c0_14, %c0_15] : memref<9x16x4xbf16, #tpu.memory_space<vmem>>, vector<1x16x4xbf16>
    %14 = vector.shape_cast %13 : vector<1x16x4xbf16> to vector<16x4xbf16>
    %c3 = arith.constant 3 : index
    %c0_16 = arith.constant 0 : index
    %c0_17 = arith.constant 0 : index
    %15 = vector.load %arg4[%c3, %c0_16, %c0_17] : memref<9x16x4xbf16, #tpu.memory_space<vmem>>, vector<1x16x4xbf16>
    %16 = vector.shape_cast %15 : vector<1x16x4xbf16> to vector<16x4xbf16>
    %c4 = arith.constant 4 : index
    %c0_18 = arith.constant 0 : index
    %c0_19 = arith.constant 0 : index
    %17 = vector.load %arg4[%c4, %c0_18, %c0_19] : memref<9x16x4xbf16, #tpu.memory_space<vmem>>, vector<1x16x4xbf16>
    %18 = vector.shape_cast %17 : vector<1x16x4xbf16> to vector<16x4xbf16>
    %c5 = arith.constant 5 : index
    %c0_20 = arith.constant 0 : index
    %c0_21 = arith.constant 0 : index
    %19 = vector.load %arg4[%c5, %c0_20, %c0_21] : memref<9x16x4xbf16, #tpu.memory_space<vmem>>, vector<1x16x4xbf16>
    %20 = vector.shape_cast %19 : vector<1x16x4xbf16> to vector<16x4xbf16>
    %c6 = arith.constant 6 : index
    %c0_22 = arith.constant 0 : index
    %c0_23 = arith.constant 0 : index
    %21 = vector.load %arg4[%c6, %c0_22, %c0_23] : memref<9x16x4xbf16, #tpu.memory_space<vmem>>, vector<1x16x4xbf16>
    %22 = vector.shape_cast %21 : vector<1x16x4xbf16> to vector<16x4xbf16>
    %c7 = arith.constant 7 : index
    %c0_24 = arith.constant 0 : index
    %c0_25 = arith.constant 0 : index
    %23 = vector.load %arg4[%c7, %c0_24, %c0_25] : memref<9x16x4xbf16, #tpu.memory_space<vmem>>, vector<1x16x4xbf16>
    %24 = vector.shape_cast %23 : vector<1x16x4xbf16> to vector<16x4xbf16>
    %c8 = arith.constant 8 : index
    %c0_26 = arith.constant 0 : index
    %c0_27 = arith.constant 0 : index
    %25 = vector.load %arg4[%c8, %c0_26, %c0_27] : memref<9x16x4xbf16, #tpu.memory_space<vmem>>, vector<1x16x4xbf16>
    %26 = vector.shape_cast %25 : vector<1x16x4xbf16> to vector<16x4xbf16>
    %cst = arith.constant 0.000000e+00 : f32
    %27 = vector.broadcast %cst : f32 to vector<16x1xf32>
    %cst_28 = arith.constant 0.000000e+00 : f32
    %28 = vector.broadcast %cst_28 : f32 to vector<16x1xf32>
    %cst_29 = arith.constant 0.000000e+00 : f32
    %29 = vector.broadcast %cst_29 : f32 to vector<16x256xf32>
    %c0_30 = arith.constant 0 : index
    %c0_31 = arith.constant 0 : index
    %30 = vector.load %arg8[%c0_30, %c0_31] : memref<4x512xbf16, #tpu.memory_space<vmem>>, vector<4x256xbf16>
    %cst_32 = arith.constant dense<0.000000e+00> : vector<16x256xf32>
    %31 = tpu.matmul %10, %30, %cst_32 {dimension_numbers = #tpu.dot_dimension_numbers<[1], [0], [0], [1], [0, 0, 1, 1], [], []>} : vector<16x4xbf16>, vector<4x256xbf16>, vector<16x256xf32> -> vector<16x256xf32>
    %32 = arith.addf %29, %31 : vector<16x256xf32>
    %c0_33 = arith.constant 0 : index
    %c1_34 = arith.constant 1 : index
    %33 = vector.load %arg8[%c0_33, %c1_34] : memref<4x512xbf16, #tpu.memory_space<vmem>>, vector<4x256xbf16>
    %cst_35 = arith.constant dense<0.000000e+00> : vector<16x256xf32>
    %34 = tpu.matmul %12, %33, %cst_35 {dimension_numbers = #tpu.dot_dimension_numbers<[1], [0], [0], [1], [0, 0, 1, 1], [], []>} : vector<16x4xbf16>, vector<4x256xbf16>, vector<16x256xf32> -> vector<16x256xf32>
    %35 = arith.addf %32, %34 : vector<16x256xf32>
    %c0_36 = arith.constant 0 : index
    %c2_37 = arith.constant 2 : index
    %36 = vector.load %arg8[%c0_36, %c2_37] : memref<4x512xbf16, #tpu.memory_space<vmem>>, vector<4x256xbf16>
    %cst_38 = arith.constant dense<0.000000e+00> : vector<16x256xf32>
    %37 = tpu.matmul %14, %36, %cst_38 {dimension_numbers = #tpu.dot_dimension_numbers<[1], [0], [0], [1], [0, 0, 1, 1], [], []>} : vector<16x4xbf16>, vector<4x256xbf16>, vector<16x256xf32> -> vector<16x256xf32>
    %38 = arith.addf %35, %37 : vector<16x256xf32>
    %c0_39 = arith.constant 0 : index
    %c16 = arith.constant 16 : index
    %39 = vector.load %arg8[%c0_39, %c16] : memref<4x512xbf16, #tpu.memory_space<vmem>>, vector<4x256xbf16>
    %cst_40 = arith.constant dense<0.000000e+00> : vector<16x256xf32>
    %40 = tpu.matmul %16, %39, %cst_40 {dimension_numbers = #tpu.dot_dimension_numbers<[1], [0], [0], [1], [0, 0, 1, 1], [], []>} : vector<16x4xbf16>, vector<4x256xbf16>, vector<16x256xf32> -> vector<16x256xf32>
    %41 = arith.addf %38, %40 : vector<16x256xf32>
    %c0_41 = arith.constant 0 : index
    %c17 = arith.constant 17 : index
    %42 = vector.load %arg8[%c0_41, %c17] : memref<4x512xbf16, #tpu.memory_space<vmem>>, vector<4x256xbf16>
    %cst_42 = arith.constant dense<0.000000e+00> : vector<16x256xf32>
    %43 = tpu.matmul %18, %42, %cst_42 {dimension_numbers = #tpu.dot_dimension_numbers<[1], [0], [0], [1], [0, 0, 1, 1], [], []>} : vector<16x4xbf16>, vector<4x256xbf16>, vector<16x256xf32> -> vector<16x256xf32>
    %44 = arith.addf %41, %43 : vector<16x256xf32>
    %c0_43 = arith.constant 0 : index
    %c18 = arith.constant 18 : index
    %45 = vector.load %arg8[%c0_43, %c18] : memref<4x512xbf16, #tpu.memory_space<vmem>>, vector<4x256xbf16>
    %cst_44 = arith.constant dense<0.000000e+00> : vector<16x256xf32>
    %46 = tpu.matmul %20, %45, %cst_44 {dimension_numbers = #tpu.dot_dimension_numbers<[1], [0], [0], [1], [0, 0, 1, 1], [], []>} : vector<16x4xbf16>, vector<4x256xbf16>, vector<16x256xf32> -> vector<16x256xf32>
    %47 = arith.addf %44, %46 : vector<16x256xf32>
    %c0_45 = arith.constant 0 : index
    %c32 = arith.constant 32 : index
    %48 = vector.load %arg8[%c0_45, %c32] : memref<4x512xbf16, #tpu.memory_space<vmem>>, vector<4x256xbf16>
    %cst_46 = arith.constant dense<0.000000e+00> : vector<16x256xf32>
    %49 = tpu.matmul %22, %48, %cst_46 {dimension_numbers = #tpu.dot_dimension_numbers<[1], [0], [0], [1], [0, 0, 1, 1], [], []>} : vector<16x4xbf16>, vector<4x256xbf16>, vector<16x256xf32> -> vector<16x256xf32>
    %50 = arith.addf %47, %49 : vector<16x256xf32>
    %c0_47 = arith.constant 0 : index
    %c33 = arith.constant 33 : index
    %51 = vector.load %arg8[%c0_47, %c33] : memref<4x512xbf16, #tpu.memory_space<vmem>>, vector<4x256xbf16>
    %cst_48 = arith.constant dense<0.000000e+00> : vector<16x256xf32>
    %52 = tpu.matmul %24, %51, %cst_48 {dimension_numbers = #tpu.dot_dimension_numbers<[1], [0], [0], [1], [0, 0, 1, 1], [], []>} : vector<16x4xbf16>, vector<4x256xbf16>, vector<16x256xf32> -> vector<16x256xf32>
    %53 = arith.addf %50, %52 : vector<16x256xf32>
    %c0_49 = arith.constant 0 : index
    %c34 = arith.constant 34 : index
    %54 = vector.load %arg8[%c0_49, %c34] : memref<4x512xbf16, #tpu.memory_space<vmem>>, vector<4x256xbf16>
    %cst_50 = arith.constant dense<0.000000e+00> : vector<16x256xf32>
    %55 = tpu.matmul %26, %54, %cst_50 {dimension_numbers = #tpu.dot_dimension_numbers<[1], [0], [0], [1], [0, 0, 1, 1], [], []>} : vector<16x4xbf16>, vector<4x256xbf16>, vector<16x256xf32> -> vector<16x256xf32>
    %56 = arith.addf %53, %55 : vector<16x256xf32>
    %c0_51 = arith.constant 0 : index
    %c0_52 = arith.constant 0 : index
    %57 = vector.load %arg5[%c0_51, %c0_52] : memref<1x256xf32, #tpu.memory_space<vmem>>, vector<1x256xf32>
    %58 = vector.broadcast %57 : vector<1x256xf32> to vector<16x256xf32>
    %59 = arith.mulf %56, %58 : vector<16x256xf32>
    %cst_53 = arith.constant dense<0.000000e+00> : vector<16xf32>
    %60 = vector.multi_reduction <add>, %59, %cst_53 [1] : vector<16x256xf32> to vector<16xf32>
    %61 = vector.shape_cast %60 : vector<16xf32> to vector<16x1xf32>
    %62 = arith.addf %27, %61 : vector<16x1xf32>
    %63 = arith.mulf %59, %56 : vector<16x256xf32>
    %cst_54 = arith.constant dense<0.000000e+00> : vector<16xf32>
    %64 = vector.multi_reduction <add>, %63, %cst_54 [1] : vector<16x256xf32> to vector<16xf32>
    %65 = vector.shape_cast %64 : vector<16xf32> to vector<16x1xf32>
    %66 = arith.addf %28, %65 : vector<16x1xf32>
    %c0_55 = arith.constant 0 : index
    %c0_56 = arith.constant 0 : index
    %c0_57 = arith.constant 0 : index
    %67 = vector.load %arg6[%c0_55, %c0_56, %c0_57] : memref<1x16x1xf32, #tpu.memory_space<vmem>>, vector<1x16x1xf32>
    %68 = vector.shape_cast %67 : vector<1x16x1xf32> to vector<16x1xf32>
    %69 = arith.addf %68, %62 : vector<16x1xf32>
    %c0_58 = arith.constant 0 : index
    %c0_59 = arith.constant 0 : index
    %c0_60 = arith.constant 0 : index
    %70 = vector.load %arg6[%c0_58, %c0_59, %c0_60] : memref<1x16x1xf32, #tpu.memory_space<vmem>>, vector<1x16x1xf32>
    %71 = vector.shape_cast %70 : vector<1x16x1xf32> to vector<16x1xf32>
    %72 = vector.shape_cast %69 : vector<16x1xf32> to vector<1x16x1xf32>
    tpu.vector_store %arg6[%c0_58, %c0_59, %c0_60], %72 {strides = array<i32>} : memref<1x16x1xf32, #tpu.memory_space<vmem>>, vector<1x16x1xf32>,
    %c0_61 = arith.constant 0 : index
    %c0_62 = arith.constant 0 : index
    %c0_63 = arith.constant 0 : index
    %73 = vector.load %arg7[%c0_61, %c0_62, %c0_63] : memref<1x16x1xf32, #tpu.memory_space<vmem>>, vector<1x16x1xf32>
    %74 = vector.shape_cast %73 : vector<1x16x1xf32> to vector<16x1xf32>
    %75 = arith.addf %74, %66 : vector<16x1xf32>
    %c0_64 = arith.constant 0 : index
    %c0_65 = arith.constant 0 : index
    %c0_66 = arith.constant 0 : index
    %76 = vector.load %arg7[%c0_64, %c0_65, %c0_66] : memref<1x16x1xf32, #tpu.memory_space<vmem>>, vector<1x16x1xf32>
    %77 = vector.shape_cast %76 : vector<1x16x1xf32> to vector<16x1xf32>
    %78 = vector.shape_cast %75 : vector<16x1xf32> to vector<1x16x1xf32>
    tpu.vector_store %arg7[%c0_64, %c0_65, %c0_66], %78 {strides = array<i32>} : memref<1x16x1xf32, #tpu.memory_space<vmem>>, vector<1x16x1xf32>,
    return
  }
  func.func @transform_0(%arg0: i32, %arg1: i32) -> (i32, i32, i32) {
    %c0_i32 = arith.constant 0 : i32
    %c0_i32_0 = arith.constant 0 : i32
    return %arg0, %c0_i32, %arg1 : i32, i32, i32
  }
  func.func @transform_1(%arg0: i32, %arg1: i32) -> (i32, i32, i32) {
    %c1_i32 = arith.constant 1 : i32
    %0 = arith.addi %arg1, %c1_i32 : i32
    %c0_i32 = arith.constant 0 : i32
    %1 = arith.minsi %0, %c0_i32 : i32
    %c0_i32_0 = arith.constant 0 : i32
    %c0_i32_1 = arith.constant 0 : i32
    return %arg0, %c0_i32_0, %1 : i32, i32, i32
  }
  func.func @transform_2(%arg0: i32, %arg1: i32) -> (i32, i32, i32) {
    %c0_i32 = arith.constant 0 : i32
    %c0_i32_0 = arith.constant 0 : i32
    %c0_i32_1 = arith.constant 0 : i32
    %c0_i32_2 = arith.constant 0 : i32
    return %c0_i32, %c0_i32_0, %c0_i32_1 : i32, i32, i32
  }
  func.func @transform_3(%arg0: i32, %arg1: i32) -> (i32, i32) {
    %c0_i32 = arith.constant 0 : i32
    %c0_i32_0 = arith.constant 0 : i32
    return %c0_i32, %arg1 : i32, i32
  }
  func.func @transform_4(%arg0: i32, %arg1: i32) -> (i32, i32, i32) {
    %c0_i32 = arith.constant 0 : i32
    %c0_i32_0 = arith.constant 0 : i32
    %c0_i32_1 = arith.constant 0 : i32
    return %arg0, %c0_i32, %c0_i32_0 : i32, i32, i32
  }
  func.func @transform_5(%arg0: i32, %arg1: i32) -> (i32, i32, i32) {
    %c0_i32 = arith.constant 0 : i32
    %c0_i32_0 = arith.constant 0 : i32
    %c0_i32_1 = arith.constant 0 : i32
    return %arg0, %c0_i32, %c0_i32_0 : i32, i32, i32
  }
}

</mosaic_0001>

<bundles_post_ra>
// kernel: tpu_custom_call.1
= control target key start
LH: loop header
LB: loop body
LE: loop exit
PB: predicated region body
PF: predicated region fallthrough
CT: control target
= control target key end

     0   :  { %s1546_s18 = smov 0   ;;  %s1548_s19 = smov 0   ;;  %s1698_s0 = inlined_call_operand.vmem [shape: bf16[2,4,256], index: 0, kind: input, shape index: {}]   ;;  %s1699_s1 = inlined_call_operand.vmem [shape: bf16[2,4,256], index: 1, kind: input, shape index: {}]   ;;  %s1700_s2 = inlined_call_operand.vmem [shape: bf16[9,16,4], index: 2, kind: input, shape index: {}]   ;;  %s1701_s3 = inlined_call_operand.vmem [shape: f32[1,256], index: 3, kind: input, shape index: {}]   ;;  %s1702_s4 = inlined_call_operand.vmem [shape: f32[2,16,1], index: 4, kind: output, shape index: {0}]   ;;  %s1703_s5 = inlined_call_operand.vmem [shape: f32[2,16,1], index: 5, kind: output, shape index: {1}]  }
   0x1   :  { %s1550_s20 = smov 0  }
   0x2 LB: > { %s28_s21 = sadd.s32 1, %s1499_s19  ;;  %p1338_p0 = scmp.ge.s32.totalorder %s1503_s20, 1  ;;  %s1503_s20 = sphi %s1550_s20, %s16_s20   ;;  %s1499_s19 = sphi %s1548_s19, %s1705_s19   ;;  %s1495_s18 = sphi %s1546_s18, %s1704_s18  }
   0x3   : > { %p30_p1 = scmp.ge.s32.totalorder %s28_s21, 2  ;;  %p248_p2 = scmp.lt.s32.totalorder %s1503_s20, 3 }
   0x5   : > { %s1707_s21 = smov (%p30_p1, %s28_s21), 0  ;;  %p249_p3 = pnand %p1338_p0, %p248_p2 }
   0x6   : > { %p302_p4 = scmp.lt.s32.totalorder (!%p249_p3), %s1495_s18, 1  ;;  %v1505_v0 = vmov (!%p249_p3), 1983009808   ;;  %v394_v2 = vlaneseq (!%p249_p3)  ;;  %v1506_v8 = vmov (!%p249_p3), 0   ;;  %s1507_s29 = smov (!%p249_p3), 111   ;;  %vm740_vm0 = vcmask (!%p249_p3), 908288  }
   0x7   : > { %252 = sbr.rel (%p249_p3) target bundleno = 573 (0x23d), region = 36  ;;  %v392_v1 = vunpack.c.l.s4 (!%p249_p3), %v1505_v0  ;;  %784 = vmatprep.mubr.bf16.mxu0 (!%p249_p3), %v1506_v8  ;;  %458 = vmatprep.mubr.bf16.mxu1 (!%p249_p3), %v1506_v8  ;;  %s1508_s30 = smov (!%p249_p3), 127   ;;  %vm419_vm1 = vcmask (!%p249_p3), 1041408   ;;  %v1472_v56 = vld [vmem:[%s1700_s2 + $0x20] sm:$0xff] (!%p249_p3)   ;;  %vm415_vm2 = vcmask (!%p249_p3), 31744   ;;  %vm412_vm3 = vcmask (!%p249_p3), 1039360  }
   0x8   : > { %v1573_v6 = vshrl.u32 (!%p249_p3), %v394_v2, 7  ;;  %s1509_s6 = smov (!%p249_p3), 110   ;;  %s1510_s7 = smov (!%p249_p3), 96   ;;  %vm828_vm4 = vcmask (!%p249_p3), 900096   ;;  %v1473_v2 = vld [vmem:[%s1700_s2 + $0x8] sm:$0xff] (!%p249_p3)   ;;  %vm916_vm5 = vcmask (!%p249_p3), 785408  }
   0x9   : > { %v393_v5 = vunpack.c.0.s8 (!%p249_p3), %v392_v1  ;;  %s1511_s8 = smov (!%p249_p3), 126   ;;  %s1512_s9 = smov (!%p249_p3), 95   ;;  %vm564_vm6 = vcmask (!%p249_p3), 1031168   ;;  %vm1004_vm7 = vcmask (!%p249_p3), 777216   ;;  %vm652_vm8 = vcmask (!%p249_p3), 916480  }
   0xa   : > { %s1513_s10 = smov (!%p249_p3), 112   ;;  %s1514_s11 = smov (!%p249_p3), 94   ;;  %vm1092_vm9 = vcmask (!%p249_p3), 769024   ;;  %vm347_vm10 = vcmask (!%p249_p3), 7168  }
   0xb   : > { %v1576_v7 = vsub.s32 (!%p249_p3), %v393_v5, %v1573_v6 }
   0xe   : > { %s1709_s18 = smov (!%p302_p4, %s1495_s18), 1 }
   0xf   : > { %s1393_s22 = sshll.u32 %s1709_s18, 2 }
  0x10   : > { %s309_s25 = scalar_lea.vmem %s1698_s0, %s1393_s22  ;;  %s322_s28 = scalar_lea.vmem %s1699_s1, %s1393_s22 }
  0x11   : > { %v352_v3 = vld [vmem:[%s309_s25] sm:$0xf] }
  0x12   : > { %v354_v4 = vld [vmem:[%s322_s28] sm:$0xf]  ;;  %353 = vst [vmem:[#allocation2] sm:$0xf] %v352_v3 }
  0x13   : > { %355 = vst [vmem:[#allocation2 + $0x4] sm:$0xf] %v354_v4 }
  0x19   : > { %v1367_v58 = vld.sshfl [vmem:[#allocation2] sm:$0x33 pattern:$0x76325410] }
  0x1a   : > { %v711_v9 = vld [vmem:[#allocation2] sm:$0x3f]  ;;  %v482_v61 = vcombine.high %v1367_v58, %v1367_v58  ;;  %v487_v5 = vsel %vm419_vm1, %v1367_v58, 0 }
  0x1b   : > { %v725_v10 = vrot.slane %v711_v9, %v1576_v7  ;;  %v718_v11 = vcombine.high %v711_v9, %v711_v9  ;;  %v383_v12 = vld [vmem:[#allocation2] sm:$0x3f] }
  0x1c   : > { %v799_v15 = vld [vmem:[#allocation2] sm:$0x3f]  ;;  %v397_v16 = vrot.slane %v383_v12, %v1576_v7  ;;  %v390_v17 = vcombine.high %v383_v12, %v383_v12 }
  0x1d   : > { %734 = vrot.lane.b32.xlu0 %v725_v10, %s1507_s29  ;;  %v733_v13 = vcombine.high %v725_v10, %v725_v10  ;;  %v732_v14 = vrot.slane %v718_v11, %v1576_v7  ;;  %v813_v18 = vrot.slane %v799_v15, %v1576_v7  ;;  %v806_v21 = vcombine.high %v799_v15, %v799_v15  ;;  %v887_v23 = vld [vmem:[#allocation2] sm:$0x3f]  ;;  %v1474_v11 = vld [vmem:[%s1700_s2 + $0x28] sm:$0xff]  }
  0x1e   : > { %v404_v19 = vrot.slane %v390_v17, %v1576_v7  ;;  %v405_v20 = vcombine.high %v397_v16, %v397_v16  ;;  %v901_v25 = vrot.slane %v887_v23, %v1576_v7  ;;  %v894_v26 = vcombine.high %v887_v23, %v887_v23  ;;  %v535_v27 = vld [vmem:[#allocation2] sm:$0x3f] }
  0x1f   : > { %738 = vrot.lane.b32.xlu1 %v732_v14, %s1507_s29  ;;  %v821_v22 = vcombine.high %v813_v18, %v813_v18  ;;  %v820_v24 = vrot.slane %v806_v21, %v1576_v7  ;;  %v549_v30 = vrot.slane %v535_v27, %v1576_v7  ;;  %v542_v31 = vcombine.high %v535_v27, %v535_v27  ;;  %v975_v33 = vld [vmem:[#allocation2] sm:$0x3f] }
  0x20   : > { %v909_v28 = vcombine.high %v901_v25, %v901_v25  ;;  %v908_v29 = vrot.slane %v894_v26, %v1576_v7  ;;  %v989_v35 = vrot.slane %v975_v33, %v1576_v7  ;;  %v982_v36 = vcombine.high %v975_v33, %v975_v33  ;;  %v623_v37 = vld [vmem:[#allocation2] sm:$0x3f]  ;;  %v1477_v33 = vld [vmem:[%s1700_s2 + $0x10] sm:$0xff]  }
  0x21   : > { %736 = vrot.lane.b32.xlu0 %v733_v13, %s1507_s29  ;;  %v557_v32 = vcombine.high %v549_v30, %v549_v30  ;;  %v556_v34 = vrot.slane %v542_v31, %v1576_v7  ;;  %v637_v40 = vrot.slane %v623_v37, %v1576_v7  ;;  %v630_v41 = vcombine.high %v623_v37, %v623_v37  ;;  %v1063_v43 = vld [vmem:[#allocation2] sm:$0x3f] }
  0x22   : > { %v997_v38 = vcombine.high %v989_v35, %v989_v35  ;;  %v996_v39 = vrot.slane %v982_v36, %v1576_v7  ;;  %v1077_v45 = vrot.slane %v1063_v43, %v1576_v7  ;;  %v1070_v46 = vcombine.high %v1063_v43, %v1063_v43 }
  0x23   : > { %406 = vrot.lane.b32.xlu1 %v397_v16, %s1508_s30  ;;  %v645_v42 = vcombine.high %v637_v40, %v637_v40  ;;  %v644_v44 = vrot.slane %v630_v41, %v1576_v7 }
  0x24   : > { %v1085_v47 = vcombine.high %v1077_v45, %v1077_v45  ;;  %v1084_v48 = vrot.slane %v1070_v46, %v1576_v7  ;;  %v1480_v46 = vld [vmem:[%s1700_s2 + $0x40] sm:$0xff]  }
  0x25   : > { %822 = vrot.lane.b32.xlu0 %v813_v18, %s1509_s6 }
  0x27   : > { %410 = vrot.lane.b32.xlu1 %v404_v19, %s1508_s30  ;;  %v1475_v19 = vld [vmem:[%s1700_s2] sm:$0xff]  }
  0x29   : > { %408 = vrot.lane.b32.xlu0 %v405_v20, %s1508_s30 }
  0x2b   : > { %824 = vrot.lane.b32.xlu1 %v821_v22, %s1509_s6 }
  0x2d   : > { %826 = vrot.lane.b32.xlu0 %v820_v24, %s1509_s6 }
  0x2f   : > { %910 = vrot.lane.b32.xlu1 %v901_v25, %s1510_s7  ;;  %v1476_v25 = vld [vmem:[%s1700_s2 + $0x30] sm:$0xff]  }
  0x31   : > { %912 = vrot.lane.b32.xlu0 %v909_v28, %s1510_s7 }
  0x33   : > { %914 = vrot.lane.b32.xlu1 %v908_v29, %s1510_s7 }
  0x35   : > { %558 = vrot.lane.b32.xlu0 %v549_v30, %s1511_s8 }
  0x37   : > { %560 = vrot.lane.b32.xlu1 %v557_v32, %s1511_s8 }
  0x39   : > { %562 = vrot.lane.b32.xlu0 %v556_v34, %s1511_s8 }
  0x3b   : > { %998 = vrot.lane.b32.xlu1 %v989_v35, %s1512_s9 }
  0x3d   : > { %1000 = vrot.lane.b32.xlu0 %v997_v38, %s1512_s9 }
  0x3f   : > { %1002 = vrot.lane.b32.xlu1 %v996_v39, %s1512_s9  ;;  %v1478_v39 = vld [vmem:[%s1700_s2 + $0x38] sm:$0xff]   ;;  %s1395_s9 = sshll.u32 %s1709_s18, 4 }
  0x40   : > { %s1663_s12 = scalar_lea.vmem %s1702_s4, %s1395_s9  ;;  %s341_s17 = scalar_lea.vmem %s1703_s5, %s1395_s9 }
  0x41   : > { %646 = vrot.lane.b32.xlu0 %v637_v40, %s1513_s10 }
  0x43   : > { %648 = vrot.lane.b32.xlu1 %v645_v42, %s1513_s10 }
  0x45   : > { %650 = vrot.lane.b32.xlu0 %v644_v44, %s1513_s10 }
  0x47   : > { %1086 = vrot.lane.b32.xlu1 %v1077_v45, %s1514_s11  ;;  %v1479_v45 = vld [vmem:[%s1700_s2 + $0x18] sm:$0xff]  }
  0x49   : > { %1088 = vrot.lane.b32.xlu0 %v1085_v47, %s1514_s11  ;;  %v1155_v47 = vsub.s32 0, %v1573_v6 }
  0x4b   : > { %1090 = vrot.lane.b32.xlu1 %v1084_v48, %s1514_s11 }
  0x8f   : > { %v735_v49 = vpop.permute.xlu0 %734 }
  0x91   : > { %v739_v50 = vpop.permute.xlu1 %738 }
  0x93   : > { %v737_v51 = vpop.permute.xlu0 %736 }
  0x94   : > { %v742_v52 = vsel %vm740_vm0, %v737_v51, %v739_v50  ;;  %v741_v53 = vsel %vm740_vm0, %v735_v49, %v737_v51  ;;  %v1151_v49 = vld [vmem:[%s1701_s3] sm:$0x3]  ;;  %v1159_v50 = vsub.s32 1, %v1573_v6 }
  0x95   : > { %1377 = vmatprep.subr.msk.bf16.mxu0 %vm419_vm1, %v742_v52  ;;  %v407_v54 = vpop.permute.xlu1 %406  ;;  %v747_v55 = vsel %vm419_vm1, %v741_v53, 0 }
  0x96   : > { %753 = vmatpush1.bf16.msra.mxu0 %v747_v55 }
  0x97   : > { %v823_v57 = vpop.permute.xlu0 %822 }
  0x99   : > { %1378 = vmatmul.mubr.msk.bf16.vlgmr.msra.gmra.mrb[0].mxu0 %vm415_vm2, %v1472_v56  ;;  %v411_v59 = vpop.permute.xlu1 %410  ;;  %v1160_v56 = vrot.slane %v1151_v49, %v1159_v50 }
  0x9a   : > { %872 = vmatprep.mubr.bf16.mxu0 %v1506_v8 }
  0x9b   : > { %v409_v60 = vpop.permute.xlu0 %408 }
  0x9c   : > { %v414_v62 = vsel %vm412_vm3, %v409_v60, %v411_v59  ;;  %v413_v63 = vsel %vm412_vm3, %v407_v54, %v409_v60  ;;  %v1156_v54 = vrot.slane %v1151_v49, %v1155_v47 }
  0x9d   : > { %1364 = vmatprep.subr.msk.bf16.mxu1 %vm419_vm1, %v414_v62  ;;  %v825_v0 = vpop.permute.xlu1 %824  ;;  %v421_v1 = vsel %vm419_vm1, %v413_v63, 0 }
  0x9e   : > { %v829_v3 = vsel %vm828_vm4, %v823_v57, %v825_v0  ;;  %427 = vmatpush1.bf16.msra.mxu1 %v421_v1 }
  0x9f   : > { %v827_v4 = vpop.permute.xlu0 %826  ;;  %1368 = vmatprep.subr.msk.bf16.mxu1 %vm419_vm1, %v482_v61  ;;  %v835_v9 = vsel %vm419_vm1, %v829_v3, 0 }
  0xa0   : > { %v830_v7 = vsel %vm828_vm4, %v825_v0, %v827_v4 }
  0xa1   : > { %1365 = vmatmul.mubr.msk.bf16.vlgmr.msra.gmra.mrb[0].mxu1 %vm415_vm2, %v1473_v2  ;;  %1380 = vmatprep.subr.msk.bf16.mxu0 %vm419_vm1, %v830_v7  ;;  %v911_v10 = vpop.permute.xlu1 %910 }
  0xa2   : > { %841 = vmatpush1.bf16.msra.mxu0 %v835_v9  ;;  %493 = vmatpush1.bf16.msra.mxu1 %v487_v5 }
  0xa3   : > { %v913_v12 = vpop.permute.xlu0 %912  ;;  %524 = vmatprep.mubr.bf16.mxu1 %v1506_v8 }
  0xa4   : > { %v917_v13 = vsel %vm916_vm5, %v911_v10, %v913_v12 }
  0xa5   : > { %1381 = vmatmul.mubr.msk.bf16.vlgmr.msra.gmra.mrb[0].mxu0 %vm415_vm2, %v1474_v11  ;;  %v923_v14 = vsel %vm419_vm1, %v917_v13, 0  ;;  %v915_v15 = vpop.permute.xlu1 %914 }
  0xa6   : > { %v918_v16 = vsel %vm916_vm5, %v913_v12, %v915_v15  ;;  %960 = vmatprep.mubr.bf16.mxu0 %v1506_v8 }
  0xa7   : > { %1383 = vmatprep.subr.msk.bf16.mxu0 %vm419_vm1, %v918_v16  ;;  %v559_v17 = vpop.permute.xlu0 %558 }
  0xa8   : > { %929 = vmatpush1.bf16.msra.mxu0 %v923_v14 }
  0xa9   : > { %v561_v18 = vpop.permute.xlu1 %560 }
  0xaa   : > { %v565_v20 = vsel %vm564_vm6, %v559_v17, %v561_v18 }
  0xab   : > { %v571_v21 = vsel %vm419_vm1, %v565_v20, 0  ;;  %v563_v22 = vpop.permute.xlu0 %562 }
  0xac   : > { %v566_v23 = vsel %vm564_vm6, %v561_v18, %v563_v22 }
  0xad   : > { %1369 = vmatmul.mubr.msk.bf16.vlgmr.msra.gmra.mrb[0].mxu1 %vm415_vm2, %v1475_v19  ;;  %v999_v24 = vpop.permute.xlu1 %998  ;;  %1371 = vmatprep.subr.msk.bf16.mxu1 %vm419_vm1, %v566_v23 }
  0xae   : > { %577 = vmatpush1.bf16.msra.mxu1 %v571_v21  ;;  %608 = vmatprep.mubr.bf16.mxu1 %v1506_v8 }
  0xaf   : > { %v1001_v26 = vpop.permute.xlu0 %1000 }
  0xb0   : > { %v1005_v27 = vsel %vm1004_vm7, %v999_v24, %v1001_v26 }
  0xb1   : > { %1384 = vmatmul.mubr.msk.bf16.vlgmr.msra.gmra.mrb[0].mxu0 %vm415_vm2, %v1476_v25  ;;  %v1011_v28 = vsel %vm419_vm1, %v1005_v27, 0  ;;  %v1003_v29 = vpop.permute.xlu1 %1002 }
  0xb2   : > { %v1006_v30 = vsel %vm1004_vm7, %v1001_v26, %v1003_v29  ;;  %1048 = vmatprep.mubr.bf16.mxu0 %v1506_v8 }
  0xb3   : > { %1386 = vmatprep.subr.msk.bf16.mxu0 %vm419_vm1, %v1006_v30  ;;  %v647_v31 = vpop.permute.xlu0 %646 }
  0xb4   : > { %1017 = vmatpush1.bf16.msra.mxu0 %v1011_v28 }
  0xb5   : > { %v649_v32 = vpop.permute.xlu1 %648 }
  0xb6   : > { %v653_v34 = vsel %vm652_vm8, %v647_v31, %v649_v32 }
  0xb7   : > { %v659_v35 = vsel %vm419_vm1, %v653_v34, 0  ;;  %v651_v36 = vpop.permute.xlu0 %650 }
  0xb8   : > { %v654_v37 = vsel %vm652_vm8, %v649_v32, %v651_v36 }
  0xb9   : > { %1372 = vmatmul.mubr.msk.bf16.vlgmr.msra.gmra.mrb[0].mxu1 %vm415_vm2, %v1477_v33  ;;  %v1087_v38 = vpop.permute.xlu1 %1086  ;;  %1374 = vmatprep.subr.msk.bf16.mxu1 %vm419_vm1, %v654_v37 }
  0xba   : > { %665 = vmatpush1.bf16.msra.mxu1 %v659_v35  ;;  %696 = vmatprep.mubr.bf16.mxu1 %v1506_v8 }
  0xbb   : > { %v1089_v40 = vpop.permute.xlu0 %1088 }
  0xbc   : > { %v1093_v41 = vsel %vm1092_vm9, %v1087_v38, %v1089_v40 }
  0xbd   : > { %1387 = vmatmul.mubr.msk.bf16.vlgmr.msra.gmra.mrb[0].mxu0 %vm415_vm2, %v1478_v39  ;;  %v1099_v42 = vsel %vm419_vm1, %v1093_v41, 0  ;;  %v1091_v43 = vpop.permute.xlu1 %1090 }
  0xbe   : > { %v1094_v44 = vsel %vm1092_vm9, %v1089_v40, %v1091_v43  ;;  %1136 = vmatprep.mubr.bf16.mxu0 %v1506_v8  ;;  %v1515_v8 = vmov 0.0  }
  0xbf   : > { %1389 = vmatprep.subr.msk.bf16.mxu0 %vm419_vm1, %v1094_v44  ;;  %348 = vst.msk [vmem:[%s1663_s12] sm:$0xff] %vm347_vm10, %v1515_v8  ;;  %349 = vst.msk [vmem:[%s1663_s12 + $0x8] sm:$0xff] %vm347_vm10, %v1515_v8 }
  0xc0   : > { %1105 = vmatpush1.bf16.msra.mxu0 %v1099_v42  ;;  %350 = vst.msk [vmem:[%s341_s17] sm:$0xff] %vm347_vm10, %v1515_v8  ;;  %351 = vst.msk [vmem:[%s341_s17 + $0x8] sm:$0xff] %vm347_vm10, %v1515_v8 }
  0xc5   : > { %1375 = vmatmul.mubr.msk.bf16.vlgmr.msra.gmra.mrb[0].mxu1 %vm415_vm2, %v1479_v45 }
  0xc6   : > { %v1187_v13 = vld [vmem:[%s1663_s12] sm:$0xff]  ;;  %v1188_v15 = vld [vmem:[%s1663_s12 + $0x8] sm:$0xff] }
  0xc7   : > { %v1194_v18 = vld [vmem:[%s341_s17] sm:$0xff]  ;;  %v1195_v22 = vld [vmem:[%s341_s17 + $0x8] sm:$0xff] }
  0xc9   : > { %1390 = vmatmul.mubr.msk.bf16.vlgmr.msra.gmra.mrb[0].mxu0 %vm415_vm2, %v1480_v46 }
 0x198   : > { %v698_v48 = vpop.f32.mrb[0].mxu1 }
 0x199   : > { %v700_v51 = vpop.f32.mrb[1].mxu1 }
 0x19a   : > { %v702_v52 = vpop.f32.mrb[2].mxu1 }
 0x19b   : > { %v704_v53 = vpop.f32.mrb[3].mxu1 }
 0x19c   : > { %v1138_v55 = vpop.f32.mrb[0].mxu0 }
 0x19d   : > { %v1397_v57 = vadd.f32 %v1138_v55, %v698_v48  ;;  %v1140_v58 = vpop.f32.mrb[1].mxu0 }
 0x19e   : > { %v1398_v59 = vadd.f32 %v1140_v58, %v700_v51  ;;  %v1142_v60 = vpop.f32.mrb[2].mxu0 }
 0x19f   : > { %v1163_v61 = vmul.f32 %v1397_v57, %v1156_v54  ;;  %v1399_v62 = vadd.f32 %v1142_v60, %v702_v52  ;;  %v1144_v63 = vpop.f32.mrb[3].mxu0 }
 0x1a0   : > { %v1164_v0 = vmul.f32 %v1398_v59, %v1160_v56  ;;  %v1400_v1 = vadd.f32 %v1144_v63, %v704_v53 }
 0x1a1   : > { %v1175_v2 = vmul.f32 %v1397_v57, %v1163_v61  ;;  %v1165_v3 = vmul.f32 %v1399_v62, %v1156_v54 }
 0x1a2   : > { %v1176_v6 = vmul.f32 %v1398_v59, %v1164_v0  ;;  %v1166_v4 = vmul.f32 %v1400_v1, %v1160_v56  ;;  %v1167_v5 = vadd.f32 %v1164_v0, %v1163_v61 }
 0x1a3   : > { %v1177_v7 = vmul.f32 %v1399_v62, %v1165_v3 }
 0x1a4   : > { %v1178_v9 = vmul.f32 %v1400_v1, %v1166_v4  ;;  %1168 = vadd.xlane.f32.xlu0 %v1167_v5  ;;  %v1170_v10 = vadd.f32 %v1166_v4, %v1165_v3  ;;  %v1179_v11 = vadd.f32 %v1176_v6, %v1175_v2 }
 0x1a6   : > { %1171 = vadd.xlane.f32.xlu1 %v1170_v10  ;;  %v1182_v12 = vadd.f32 %v1178_v9, %v1177_v7 }
 0x1a8   : > { %1180 = vadd.xlane.f32.xlu0 %v1179_v11 }
 0x1ac   : > { %1183 = vadd.xlane.f32.xlu0 %v1182_v12 }
 0x231   : > { %v1169_v14 = vpop.xlane.xlu0 %1168 }
 0x232   : > { %v1189_v16 = vadd.f32 %v1187_v13, %v1169_v14 }
 0x233   : > { %v1172_v17 = vpop.xlane.xlu1 %1171 }
 0x234   : > { %1192 = vst.msk [vmem:[%s1663_s12] sm:$0xff] %vm347_vm10, %v1189_v16  ;;  %v1190_v19 = vadd.f32 %v1188_v15, %v1172_v17 }
 0x235   : > { %v1181_v20 = vpop.xlane.xlu0 %1180 }
 0x236   : > { %1193 = vst.msk [vmem:[%s1663_s12 + $0x8] sm:$0xff] %vm347_vm10, %v1190_v19  ;;  %v1196_v21 = vadd.f32 %v1194_v18, %v1181_v20 }
 0x238   : > { %1198 = vst.msk [vmem:[%s341_s17] sm:$0xff] %vm347_vm10, %v1196_v21 }
 0x239   : > { %v1184_v23 = vpop.xlane.xlu0 %1183 }
 0x23a   : > { %v1197_v24 = vadd.f32 %v1195_v22, %v1184_v23 }
 0x23c   : > { %1199 = vst.msk [vmem:[%s341_s17 + $0x8] sm:$0xff] %vm347_vm10, %v1197_v24 }
 0x23d PF: > { %s16_s20 = sadd.s32 1, %s1503_s20   ;;  %s1704_s18 = smov %s1499_s19 }
 0x23e   : > { %p13_p5 = scmp.ge.s32.totalorder %s16_s20, 4   ;;  %s1705_s19 = smov %s1707_s21 }
 0x240   :  { %15 = sbr.rel (!%p13_p5) target bundleno = 2 (0x2), region = 96 }

</bundles_post_ra>
